<compile_context>
chip_gen: v6e
topology: v6e:2x2x1
jax: 0.10.0
libtpu: 0.0.40
codegen_flags: <defaults>
</compile_context>

<pallas_src>
import functools

import jax
import jax.numpy as jnp
from jax.experimental import pallas as pl
from jax.experimental.pallas import tpu as pltpu


def _fold_partial(x, p_rows):
    """Reduce (..., RB, W) -> (p_rows, W) using only leading-axis (VALU) adds."""
    if x.ndim == 3:
        x = x.sum(axis=0)                            # over channels: vreg adds
    rb, w = x.shape
    if rb == p_rows:
        return x
    return x.reshape(rb // p_rows, p_rows, w).sum(axis=0)


def _offset_loss_kernel(*refs, min_visibility, ignore_index, rows_total,
                        row_block, tiles_per_split, needs_row_mask):
    has_vis = min_visibility > 0
    has_ign = ignore_index is not None
    has_den = has_vis or has_ign

    # Static unpacking of the (variant-dependent) ref list.
    idx = 0
    vis_ref = None
    if has_vis:
        vis_ref = refs[idx]
        idx += 1
    pred_ref, target_ref = refs[idx], refs[idx + 1]
    idx += 2
    num_ref = refs[idx]
    idx += 1
    den_ref = refs[idx] if has_den else None

    t = pl.program_id(2)                             # reduction (row-tile) axis

    @pl.when(t == 0)
    def _init():
        num_ref[...] = jnp.zeros_like(num_ref)
        if den_ref is not None:
            den_ref[...] = jnp.zeros_like(den_ref)

    target_raw = target_ref[...]                     # (C, RB, W) native dtype
    pred = pred_ref[...].astype(jnp.float32)
    diff = jnp.abs(pred - target_raw.astype(jnp.float32))   # L1, reduction='none'

    _, rb, w = diff.shape
    p_rows = num_ref.shape[0]

    # Row-validity mask: ragged tail of H / clamped duplicate split steps.
    mask2 = None                                     # (RB, W) bool
    if needs_row_mask:
        g = pl.program_id(1) * tiles_per_split + t   # unclamped global row tile
        n_valid = rows_total - g * row_block         # may be <= 0 for dup steps
        row_idx = jax.lax.broadcasted_iota(jnp.int32, (rb, w), 0)
        mask2 = row_idx < n_valid

    if has_vis:
        vis_ok = vis_ref[...] >= min_visibility      # (RB, W), native dtype cmp
        mask2 = vis_ok if mask2 is None else jnp.logical_and(mask2, vis_ok)

    mask3 = None                                     # (C, RB, W) bool
    if has_ign:
        # Compare in the target's native dtype (before the f32 cast).
        keep = target_raw != jnp.asarray(ignore_index, dtype=target_raw.dtype)
        mask3 = keep if mask2 is None else jnp.logical_and(keep, mask2[None, :, :])

    # Numerator partial (select keeps garbage in OOB boundary rows NaN-safe).
    if mask3 is not None:
        num_x = jnp.where(mask3, diff, 0.0)
    elif mask2 is not None:
        num_x = jnp.where(mask2[None, :, :], diff, 0.0)
    else:
        num_x = diff
    num_ref[...] = num_ref[...] + _fold_partial(num_x, p_rows)

    # Denominator partial (only when a mask is active; otherwise it is static).
    if den_ref is not None:
        if has_ign:
            cnt = mask3.astype(jnp.float32)          # per-channel count
        else:
            cnt = mask2.astype(jnp.float32)          # 2-D; wrapper scales by C
        den_ref[...] = den_ref[...] + _fold_partial(cnt, p_rows)


def spatial_l1_loss(pred, target, visibility=None, *, min_visibility=0,
                    ignore_index=None, eps=1e-6, target_block_bytes=2 << 20,
                    num_splits=2):
    """Pallas implementation of SpatialRegressionLoss(norm=1).forward."""
    assert pred.ndim == 4, "Must be a 4D tensor"
    B, C, H, W = pred.shape
    assert target.shape == pred.shape
    has_vis = min_visibility > 0
    has_ign = ignore_index is not None
    has_den = has_vis or has_ign
    if has_vis:
        assert visibility is not None and visibility.shape == (B, H, W)

    # --- row tiling: sublane-dense (multiple of 8) blocks over H, full-W lanes ---
    itemsize = jnp.dtype(pred.dtype).itemsize
    w_vmem = -(-W // 128) * 128                      # lane-padded row width in VMEM
    if H <= 8:
        rb = H
    else:
        budget_rows = max(
            8, (target_block_bytes // max(1, C * w_vmem * itemsize)) // 8 * 8)
        rb = max(8, min(budget_rows, (H // 8) * 8))
    num_row_tiles = pl.cdiv(H, rb)

    # Megacore-friendly split of the row-tile range (fills both v7x TCs at B=1).
    ns = num_splits if num_row_tiles >= 2 else 1
    ns = max(1, min(ns, num_row_tiles))
    tps = pl.cdiv(num_row_tiles, ns)
    needs_row_mask = (H % rb != 0) or (ns * tps != num_row_tiles)
    last_block = num_row_tiles - 1

    def row_block_idx(s, t):
        # Clamp duplicate tail steps; the in-kernel row mask zeroes them out.
        return jnp.minimum(s * tps + t, last_block)

    p_rows = min(8, rb)

    inputs = []
    in_specs = []
    if has_vis:
        inputs.append(visibility)
        in_specs.append(
            pl.BlockSpec((None, rb, W),
                         lambda b, s, t: (b, row_block_idx(s, t), 0)))
    inputs += [pred, target]
    spec4 = pl.BlockSpec((None, C, rb, W),
                         lambda b, s, t: (b, 0, row_block_idx(s, t), 0))
    in_specs += [spec4, spec4]

    # Per-(batch, split) resident vector-partial accumulators.
    acc_spec = pl.BlockSpec((None, None, p_rows, W), lambda b, s, t: (b, s, 0, 0))
    acc_shape = jax.ShapeDtypeStruct((B, ns, p_rows, W), jnp.float32)
    if has_den:
        out_shape = (acc_shape, acc_shape)           # numerator, denominator
        out_specs = (acc_spec, acc_spec)
    else:
        out_shape = acc_shape                        # numerator only
        out_specs = acc_spec

    kernel = functools.partial(
        _offset_loss_kernel,
        min_visibility=min_visibility,
        ignore_index=ignore_index,
        rows_total=H,
        row_block=rb,
        tiles_per_split=tps,
        needs_row_mask=needs_row_mask,
    )

    in_bytes = (int(pred.size) + int(target.size)) * itemsize
    if has_vis:
        in_bytes += int(visibility.size) * jnp.dtype(visibility.dtype).itemsize
    out_bytes = B * ns * p_rows * W * 4 * (2 if has_den else 1)
    cost = pl.CostEstimate(flops=int(6 * pred.size), transcendentals=0,
                           bytes_accessed=int(in_bytes + out_bytes))

    result = pl.pallas_call(
        kernel,
        out_shape=out_shape,
        grid=(B, ns, tps),
        in_specs=in_specs,
        out_specs=out_specs,
        compiler_params=pltpu.CompilerParams(
            dimension_semantics=("parallel", "parallel", "arbitrary"),
            vmem_limit_bytes=48 * 1024 * 1024,
        ),
        cost_estimate=cost,
    )(*inputs)

    if has_den:
        num_p, den_p = result
        num = jnp.sum(num_p)
        den = jnp.sum(den_p)
        if not has_ign:
            den = den * jnp.float32(C)   # visibility mask broadcasts over channels
    else:
        num = jnp.sum(result)
        den = jnp.float32(B * C * H * W)
    return num / (den + jnp.float32(eps))


class OffsetLoss:
    """JAX/Pallas port of the PyTorch OffsetLoss (norm=1 L1 spatial loss)."""

    def __init__(self, min_visibility=0, ignore_index=None, key=""):
        self.min_visibility = min_visibility
        self.ignore_index = ignore_index
        self.key = key
        self.norm = 1

    def __call__(self, prediction, batch, eps=1e-6):
        k = f"{self.key}_offset"
        pred = prediction[k]
        target = batch[k]
        assert len(pred.shape) == 4, "Must be a 4D tensor"
        visibility = batch[f"{self.key}_visibility"]
        return spatial_l1_loss(
            pred, target, visibility,
            min_visibility=self.min_visibility,
            ignore_index=self.ignore_index,
            eps=eps,
        )


def _reference_loss(pred, target, visibility, min_visibility, ignore_index, eps=1e-6):
    # Pure-JAX reference mirroring the PyTorch semantics.
    mask = jnp.ones_like(target, dtype=jnp.float32)
    if min_visibility > 0:
        vis_mask = (visibility >= min_visibility)[:, None].astype(jnp.float32)
        mask = mask * vis_mask
    if ignore_index is not None:
        mask = mask * (target != ignore_index).astype(jnp.float32)
    loss = jnp.abs(pred - target)
    return (loss * mask).sum() / (mask.sum() + eps)


if __name__ == "__main__":
    # Small shapes implied by the module: 4D offset map (B, 2, H, W) + (B, H, W) visibility.
    B, C, H, W = 2, 2, 16, 16
    key0 = jax.random.PRNGKey(0)
    k_pred, k_tgt, k_vis = jax.random.split(key0, 3)

    pred = jax.random.normal(k_pred, (B, C, H, W), dtype=jnp.float32)
    target = jax.random.normal(k_tgt, (B, C, H, W), dtype=jnp.float32)
    # Plant exact ignore_index values so that masking path is really exercised.
    target = target.at[:, :, :4, :4].set(-1.0)
    visibility = jax.random.randint(k_vis, (B, H, W), minval=0, maxval=4, dtype=jnp.int32)

    prediction_dict = {"center_offset": pred}
    batch_dict = {"center_offset": target, "center_visibility": visibility}

    configs = [
        dict(min_visibility=0, ignore_index=None),   # no masks (visibility DMA dropped)
        dict(min_visibility=2, ignore_index=None),   # visibility mask only
        dict(min_visibility=0, ignore_index=-1.0),   # ignore-index mask only
        dict(min_visibility=2, ignore_index=-1.0),   # both masks
    ]
    for cfg in configs:
        mod = OffsetLoss(key="center", **cfg)
        out = jax.block_until_ready(mod(prediction_dict, batch_dict))
        ref = _reference_loss(pred, target, visibility,
                              cfg["min_visibility"], cfg["ignore_index"])
        assert jnp.allclose(out, ref, rtol=1e-5, atol=1e-5), (cfg, out, ref)

    # Ragged H (in-kernel row-tail mask) + megacore split.
    H2, W2 = 10, 20
    pred_odd = jax.random.normal(k_pred, (B, C, H2, W2), dtype=jnp.float32)
    target_odd = jax.random.normal(k_tgt, (B, C, H2, W2), dtype=jnp.float32)
    vis_odd = jax.random.randint(k_vis, (B, H2, W2), minval=0, maxval=4, dtype=jnp.int32)
    out_odd = jax.block_until_ready(
        spatial_l1_loss(pred_odd, target_odd, vis_odd,
                        min_visibility=2, ignore_index=None))
    ref_odd = _reference_loss(pred_odd, target_odd, vis_odd, 2, None)
    assert jnp.allclose(out_odd, ref_odd, rtol=1e-5, atol=1e-5), (out_odd, ref_odd)

    # Many row tiles per split (small block budget), uneven split (clamped
    # duplicate step), ragged tail, and both masks active at once.
    H3, W3 = 50, 40
    pred3 = jax.random.normal(k_pred, (B, C, H3, W3), dtype=jnp.float32)
    target3 = jax.random.normal(k_tgt, (B, C, H3, W3), dtype=jnp.float32)
    target3 = target3.at[:, :, :5, :7].set(-1.0)
    vis3 = jax.random.randint(k_vis, (B, H3, W3), minval=0, maxval=4, dtype=jnp.int32)
    out3 = jax.block_until_ready(
        spatial_l1_loss(pred3, target3, vis3, min_visibility=2, ignore_index=-1.0,
                        target_block_bytes=4096))
    ref3 = _reference_loss(pred3, target3, vis3, 2, -1.0)
    assert jnp.allclose(out3, ref3, rtol=1e-5, atol=1e-5), (out3, ref3)

    print("KERNEL_OK")
</pallas_src>

<mosaic_0001>
module attributes {stable_mosaic.version = 11 : i64} {
  func.func @_offset_loss_kernel(%arg0: i32, %arg1: i32, %arg2: i32, %arg3: memref<1x2x16x16xf32, #tpu.memory_space<vmem>>, %arg4: memref<1x2x16x16xf32, #tpu.memory_space<vmem>>, %arg5: memref<1x1x8x16xf32, #tpu.memory_space<vmem>>) attributes {dimension_semantics = [#tpu.dimension_semantics<parallel>, #tpu.dimension_semantics<parallel>, #tpu.dimension_semantics<arbitrary>], iteration_bounds = array<i64: 2, 1, 1>, scalar_prefetch = 0 : i64, scratch_operands = 0 : i64, tpu.core_type = #tpu.core_type<tc>, window_params = [{transform_indices = @transform_0, window_bounds = array<i64: 1, 2, 16, 16>}, {transform_indices = @transform_1, window_bounds = array<i64: 1, 2, 16, 16>}, {transform_indices = @transform_2, window_bounds = array<i64: 1, 1, 8, 16>}]} {
    %c0_i32 = arith.constant 0 : i32
    %0 = arith.cmpi eq, %arg2, %c0_i32 : i32
    %1 = arith.extui %0 : i1 to i32
    %c0_i32_0 = arith.constant 0 : i32
    %2 = arith.cmpi ne, %1, %c0_i32_0 : i32
    scf.if %2 {
      %cst_17 = arith.constant 0.000000e+00 : f32
      %18 = vector.broadcast %cst_17 : f32 to vector<8x16xf32>
      %c0_18 = arith.constant 0 : index
      %c0_19 = arith.constant 0 : index
      %c0_20 = arith.constant 0 : index
      %c0_21 = arith.constant 0 : index
      %19 = vector.load %arg5[%c0_18, %c0_19, %c0_20, %c0_21] : memref<1x1x8x16xf32, #tpu.memory_space<vmem>>, vector<1x1x8x16xf32>
      %20 = vector.shape_cast %19 : vector<1x1x8x16xf32> to vector<8x16xf32>
      %21 = vector.shape_cast %18 : vector<8x16xf32> to vector<1x1x8x16xf32>
      tpu.vector_store %arg5[%c0_18, %c0_19, %c0_20, %c0_21], %21 {strides = array<i32>} : memref<1x1x8x16xf32, #tpu.memory_space<vmem>>, vector<1x1x8x16xf32>,
    } else {
    }
    %c0 = arith.constant 0 : index
    %c0_1 = arith.constant 0 : index
    %c0_2 = arith.constant 0 : index
    %c0_3 = arith.constant 0 : index
    %3 = vector.load %arg4[%c0, %c0_1, %c0_2, %c0_3] : memref<1x2x16x16xf32, #tpu.memory_space<vmem>>, vector<1x2x16x16xf32>
    %4 = vector.shape_cast %3 : vector<1x2x16x16xf32> to vector<2x16x16xf32>
    %c0_4 = arith.constant 0 : index
    %c0_5 = arith.constant 0 : index
    %c0_6 = arith.constant 0 : index
    %c0_7 = arith.constant 0 : index
    %5 = vector.load %arg3[%c0_4, %c0_5, %c0_6, %c0_7] : memref<1x2x16x16xf32, #tpu.memory_space<vmem>>, vector<1x2x16x16xf32>
    %6 = vector.shape_cast %5 : vector<1x2x16x16xf32> to vector<2x16x16xf32>
    %7 = arith.subf %6, %4 : vector<2x16x16xf32>
    %8 = math.absf %7 : vector<2x16x16xf32>
    %c0_8 = arith.constant 0 : index
    %c0_9 = arith.constant 0 : index
    %c0_10 = arith.constant 0 : index
    %c0_11 = arith.constant 0 : index
    %9 = vector.load %arg5[%c0_8, %c0_9, %c0_10, %c0_11] : memref<1x1x8x16xf32, #tpu.memory_space<vmem>>, vector<1x1x8x16xf32>
    %10 = vector.shape_cast %9 : vector<1x1x8x16xf32> to vector<8x16xf32>
    %cst = arith.constant dense<0.000000e+00> : vector<16x16xf32>
    %11 = vector.multi_reduction <add>, %8, %cst [0] : vector<2x16x16xf32> to vector<16x16xf32>
    %12 = vector.shape_cast %11 : vector<16x16xf32> to vector<2x8x16xf32>
    %cst_12 = arith.constant dense<0.000000e+00> : vector<8x16xf32>
    %13 = vector.multi_reduction <add>, %12, %cst_12 [0] : vector<2x8x16xf32> to vector<8x16xf32>
    %14 = arith.addf %10, %13 : vector<8x16xf32>
    %c0_13 = arith.constant 0 : index
    %c0_14 = arith.constant 0 : index
    %c0_15 = arith.constant 0 : index
    %c0_16 = arith.constant 0 : index
    %15 = vector.load %arg5[%c0_13, %c0_14, %c0_15, %c0_16] : memref<1x1x8x16xf32, #tpu.memory_space<vmem>>, vector<1x1x8x16xf32>
    %16 = vector.shape_cast %15 : vector<1x1x8x16xf32> to vector<8x16xf32>
    %17 = vector.shape_cast %14 : vector<8x16xf32> to vector<1x1x8x16xf32>
    tpu.vector_store %arg5[%c0_13, %c0_14, %c0_15, %c0_16], %17 {strides = array<i32>} : memref<1x1x8x16xf32, #tpu.memory_space<vmem>>, vector<1x1x8x16xf32>,
    return
  }
  func.func @transform_0(%arg0: i32, %arg1: i32, %arg2: i32) -> (i32, i32, i32, i32) {
    %c1_i32 = arith.constant 1 : i32
    %0 = arith.muli %arg1, %c1_i32 : i32
    %1 = arith.addi %0, %arg2 : i32
    %c0_i32 = arith.constant 0 : i32
    %2 = arith.minsi %1, %c0_i32 : i32
    %c0_i32_0 = arith.constant 0 : i32
    %c0_i32_1 = arith.constant 0 : i32
    %c0_i32_2 = arith.constant 0 : i32
    return %arg0, %c0_i32_0, %2, %c0_i32_1 : i32, i32, i32, i32
  }
  func.func @transform_1(%arg0: i32, %arg1: i32, %arg2: i32) -> (i32, i32, i32, i32) {
    %c1_i32 = arith.constant 1 : i32
    %0 = arith.muli %arg1, %c1_i32 : i32
    %1 = arith.addi %0, %arg2 : i32
    %c0_i32 = arith.constant 0 : i32
    %2 = arith.minsi %1, %c0_i32 : i32
    %c0_i32_0 = arith.constant 0 : i32
    %c0_i32_1 = arith.constant 0 : i32
    %c0_i32_2 = arith.constant 0 : i32
    return %arg0, %c0_i32_0, %2, %c0_i32_1 : i32, i32, i32, i32
  }
  func.func @transform_2(%arg0: i32, %arg1: i32, %arg2: i32) -> (i32, i32, i32, i32) {
    %c0_i32 = arith.constant 0 : i32
    %c0_i32_0 = arith.constant 0 : i32
    %c0_i32_1 = arith.constant 0 : i32
    return %arg0, %arg1, %c0_i32, %c0_i32_0 : i32, i32, i32, i32
  }
}

</mosaic_0001>

<bundles_post_ra>
// kernel: tpu_custom_call.1
= control target key start
LH: loop header
LB: loop body
LE: loop exit
PB: predicated region body
PF: predicated region fallthrough
CT: control target
= control target key end

     0   :  { %7 = vsyncpa [#allocation3], 0  ;;  %s853_s0 = inlined_call_operand.hbm [shape: f32[2,2,16,16], index: 0, kind: input, shape index: {}]   ;;  %s854_s1 = inlined_call_operand.hbm [shape: f32[2,2,16,16], index: 1, kind: input, shape index: {}]   ;;  %s855_s2 = inlined_call_operand.hbm [shape: f32[2,1,8,16], index: 2, kind: output, shape index: {}]  }
   0x1   :  { %9 = vsyncpa [#allocation3 + $0x1], 0 }
   0x2   :  { %10 = vsyncpa [#allocation6], 0 }
   0x3   :  { %12 = vsyncpa [#allocation6 + $0x1], 0 }
   0x4   :  { %13 = vsyncpa [#allocation4], 0 }
   0x5   :  { %15 = vsyncpa [#allocation4 + $0x1], 0  ;;  %s671_s9 = smov 0   ;;  %s673_s10 = smov 0  }
   0x6   :  { %s675_s11 = smov 0   ;;  %s677_s12 = smov 0  }
   0x7   :  { %s679_s13 = smov 0   ;;  %s681_s14 = smov 0  }
   0x8 LB: > { %s418_s15 = sadd.s32 4294967295, %s648_s14   ;;  %s419_s16 = sadd.s32 4294967294, %s648_s14   ;;  %s648_s14 = sphi %s681_s14, %s21_s14   ;;  %s644_s13 = sphi %s679_s13, %s867_s13   ;;  %s640_s12 = sphi %s677_s12, %s866_s12   ;;  %s636_s11 = sphi %s675_s11, %s865_s11   ;;  %s632_s10 = sphi %s673_s10, %s864_s10   ;;  %s628_s9 = sphi %s671_s9, %s863_s9  }
   0x9   : > { %s40_s17 = sadd.s32 1, %s644_s13  ;;  %s55_s18 = sadd.s32 1, %s636_s11 }
   0xa   : > { %p42_p0 = scmp.ge.s32.totalorder %s40_s17, 2  ;;  %p62_p1 = scmp.ne.s32.totalorder %s636_s11, %s632_s10 }
   0xb   : > { %p63_p2 = scmp.eq.s32.totalorder %s648_s14, 0  ;;  %p68_p3 = scmp.ne.s32.totalorder %s632_s10, %s628_s9 }
   0xc   : > { %s869_s17 = smov (%p42_p0, %s40_s17), 0  ;;  %p69_p5 = scmp.eq.s32.totalorder %s418_s15, 0 }
   0xd   : > { %p712_p4 = por %p63_p2, %p62_p1  ;;  %s50_s20 = ssub.s32 %s644_s13, %s869_s17 }
   0xe   : > { %p128_p6 = scmp.eq.s32.totalorder %s418_s15, 1  ;;  %p53_p7 = scmp.eq.s32.totalorder %s50_s20, 0 }
   0xf   : > { %p718_p8 = por %p69_p5, %p68_p3  ;;  %p134_p10 = scmp.eq.s32.totalorder %s419_s16, 1 }
  0x10   : > { %p722_p9 = por %p128_p6, %p62_p1  ;;  %p455_p13 = scmp.lt.s32.totalorder %s648_s14, 2 }
  0x11   : > { %s727_s23 = scalar_select %p53_p7, %s636_s11, %s55_s18  }
  0x12   : > { %p729_p11 = por %p134_p10, %p68_p3  ;;  %s736_s25 = sand.u32 1, %s636_s11  }
  0x13   : > { %s422_s26 = sshll.u32 %s736_s25, 5  ;;  %s436_s27 = sshll.u32 %s644_s13, 9 }
  0x14   : > { %s169_s30 = scalar_lea.hbm %s853_s0, %s436_s27  ;;  %s158_s3 = scalar_lea.vmem [#allocation2], %s422_s26 }
  0x15   : > { %s170_s4 = sshll.u32 %s158_s3, 4  ;;  %p749_p0 = pnand %p455_p13, %p712_p4  ;;  %s171_s4 = int_to_ptr.vmem [resolvable:$true] %s170_s4 }
  0x16   : > { %p428_p1 = scmp.ge.s32.totalorder %s648_s14, 1  ;;  %s155_s6 = scalar_lea.sflag [#allocation3], %s736_s25 }
  0x17   : > { %p510_p2 = pneg %p749_p0  ;;  %s521_s7 = scalar_lea.vmem %s171_s4, 512 }
  0x18   : > { %p522_p3 = scmp.ne.s32.totalorder %s171_s4, %s521_s7  ;;  %s650_s8 = smov [#allocation2]  }
  0x19   : > { %s526_s15 = sshll.u32 %s650_s8, 4  ;;  %s527_s15 = int_to_ptr.vmem [resolvable:$false] %s526_s15 }
  0x1a   : > { %p524_p5 = pnand %p522_p3, %p510_p2  ;;  %s528_s16 = scalar_lea.vmem %s527_s15, 1024 }
  0x1b   : > { %p529_p4 = scmp.lt.s32.totalorder %s171_s4, %s527_s15  ;;  %p530_p7 = scmp.lt.s32.totalorder %s528_s16, %s521_s7 }
  0x1c   : > { %p525_p6 = pneg %p524_p5 }
  0x1d   : > { %p531_p10 = por %p530_p7, %p529_p4 }
  0x1f   : > { %p532_p13 = pnand %p531_p10, %p525_p6 }
  0x21   : > { %535 = shalt.err (!%p532_p13)
}
  0x22   : > { %s651_s18 = smov 128   ;;  %s652_s19 = smov 8  }
  0x23   : > { %447 = dma.hbm_to_vmem [thread:$0]  (!%p749_p0), %s169_s30, 512, %s171_s4, %s155_s6, %s651_s18, %s651_s18, %s652_s19  }
  0x24   : > { %p204_p3 = scmp.lt.s32.totalorder %s648_s14, 3  ;;  %s195_s29 = scalar_lea.hbm %s854_s1, %s436_s27 }
  0x25   : > { %s184_s7 = scalar_lea.vmem [#allocation5], %s422_s26  ;;  %s181_s15 = scalar_lea.sflag [#allocation6], %s736_s25 }
  0x26   : > { %p770_p5 = pnand %p428_p1, %p204_p3  ;;  %s196_s8 = sshll.u32 %s184_s7, 4  ;;  %s197_s8 = int_to_ptr.vmem [resolvable:$true] %s196_s8 }
  0x27   : > { %s549_s16 = scalar_lea.vmem %s197_s8, 512  ;;  %s653_s30 = smov [#allocation5]  }
  0x28   : > { %p550_p6 = scmp.ne.s32.totalorder %s197_s8, %s549_s16  ;;  %s554_s4 = sshll.u32 %s653_s30, 4  ;;  %s555_s4 = int_to_ptr.vmem [resolvable:$false] %s554_s4 }
  0x29   : > { %s556_s27 = scalar_lea.vmem %s555_s4, 1024  ;;  %p557_p10 = scmp.lt.s32.totalorder %s197_s8, %s555_s4 }
  0x2a   : > { %p552_p4 = pnand %p550_p6, %p510_p2  ;;  %p558_p1 = scmp.lt.s32.totalorder %s556_s27, %s549_s16 }
  0x2c   : > { %p553_p7 = pneg %p552_p4  ;;  %p559_p13 = por %p558_p1, %p557_p10 }
  0x2e   : > { %p560_p3 = pnand %p559_p13, %p553_p7 }
  0x30   : > { %563 = shalt.err (!%p560_p3)
}
  0x31   : > { %450 = dma.hbm_to_vmem [thread:$0]  (!%p749_p0), %s195_s29, 512, %s197_s8, %s181_s15, %s651_s18, %s651_s18, %s652_s19  }
  0x32   : > { %208 = sbr.rel (%p770_p5) target bundleno = 86 (0x56), region = 28  ;;  %s785_s25 = sand.u32 (!%p770_p5), 1, %s632_s10  }
  0x33   : > { %s429_s26 = sshll.u32 (!%p770_p5), %s785_s25, 5  ;;  %s211_s6 = scalar_lea.sflag (!%p770_p5), [#allocation3], %s785_s25 }
  0x34   : > { %s214_s20 = scalar_lea.vmem (!%p770_p5), [#allocation2], %s429_s26 }
  0x37   : > { %615 = dma.done.wait (%p718_p8), %s211_s6, 512  }
  0x38   : > { %617 = vsyncadd (%p718_p8), %s211_s6, 4294966784  ;;  %s220_s5 = scalar_lea.sflag [#allocation6], %s785_s25  ;;  %s223_s18 = scalar_lea.vmem [#allocation5], %s429_s26 }
  0x39   : > { %619 = dma.done.wait (%p718_p8), %s220_s5, 512  }
  0x3a   : > { %621 = vsyncadd (%p718_p8), %s220_s5, 4294966784  ;;  %s431_s19 = sshll.u32 %s785_s25, 3  ;;  %vm261_vm0 = vcmask 130048   ;;  %v654_v0 = vmov 0.0   ;;  %v263_v1 = vld [vmem:[%s223_s18] sm:$0xff]  ;;  %v264_v2 = vld [vmem:[%s223_s18 + $0x8] sm:$0xff] }
  0x3b   : > { %s799_s28 = scalar_lea.vmem [#allocation7], %s431_s19  ;;  %v265_v3 = vld [vmem:[%s223_s18 + $0x10] sm:$0xff]  ;;  %v266_v4 = vld [vmem:[%s223_s18 + $0x18] sm:$0xff]  ;;  %v267_v5 = vld [vmem:[%s214_s20] sm:$0xff]  ;;  %s433_s21 = sshll.u32 %s640_s12, 7 }
  0x3c   : > { %262 = vst.msk [vmem:[%s799_s28] sm:$0xff] %vm261_vm0, %v654_v0  ;;  %v268_v6 = vld [vmem:[%s214_s20 + $0x8] sm:$0xff]  ;;  %v269_v7 = vld [vmem:[%s214_s20 + $0x10] sm:$0xff]  ;;  %v270_v8 = vld [vmem:[%s214_s20 + $0x18] sm:$0xff]  ;;  %v271_v9 = vsub.f32 %v267_v5, %v263_v1  ;;  %s307_s29 = sshll.u32 %s799_s28, 4  ;;  %s305_s8 = scalar_lea.hbm %s855_s2, %s433_s21  ;;  %s308_s29 = int_to_ptr.vmem [resolvable:$true] %s307_s29 }
  0x3d   : > { %v272_v10 = vsub.f32 %v268_v6, %v264_v2  ;;  %v273_v11 = vsub.f32 %v269_v7, %v265_v3  ;;  %v274_v12 = vsub.f32 %v270_v8, %v266_v4  ;;  %s293_s15 = scalar_lea.sflag [#allocation4], %s785_s25  ;;  %s564_s16 = scalar_lea.vmem %s308_s29, 128 }
  0x3e   : > { %v275_v13 = vand.u32 2147483647, %v271_v9  ;;  %p565_p8 = scmp.ne.s32.totalorder %s308_s29, %s564_s16  ;;  %s655_s30 = smov [#allocation7]  }
  0x3f   : > { %v276_v14 = vand.u32 2147483647, %v272_v10  ;;  %v277_v15 = vand.u32 2147483647, %v273_v11  ;;  %v278_v16 = vand.u32 2147483647, %v274_v12 }
  0x40   : > { %v281_v17 = vsel %vm261_vm0, %v275_v13, 0.0  ;;  %p566_p0 = pnand %p565_p8, %p722_p9  ;;  %s568_s4 = sshll.u32 %s655_s30, 4  ;;  %s569_s4 = int_to_ptr.vmem [resolvable:$false] %s568_s4 }
  0x41   : > { %v284_v18 = vsel %vm261_vm0, %v276_v14, 0.0  ;;  %v282_v19 = vsel %vm261_vm0, %v277_v15, 0.0  ;;  %v285_v20 = vsel %vm261_vm0, %v278_v16, 0.0  ;;  %s570_s12 = scalar_lea.vmem %s569_s4, 256  ;;  %p571_p5 = scmp.lt.s32.totalorder %s308_s29, %s569_s4 }
  0x42   : > { %v283_v21 = vadd.f32 %v282_v19, %v281_v17  ;;  %v286_v22 = vadd.f32 %v285_v20, %v284_v18  ;;  %p567_p2 = pneg %p566_p0  ;;  %p572_p6 = scmp.lt.s32.totalorder %s570_s12, %s564_s16 }
  0x43   : > { %v279_v23 = vld [vmem:[%s799_s28] sm:$0xff] }
  0x44   : > { %v287_v24 = vsel %vm261_vm0, %v283_v21, 0.0  ;;  %v288_v25 = vsel %vm261_vm0, %v286_v22, 0.0  ;;  %p573_p4 = por %p572_p6, %p571_p5 }
  0x45   : > { %v289_v26 = vadd.f32 %v288_v25, %v287_v24 }
  0x46   : > { %p574_p7 = pnand %p573_p4, %p567_p2 }
  0x47   : > { %v290_v27 = vadd.f32 %v289_v26, %v279_v23 }
  0x49   : > { %291 = vst.msk [vmem:[%s799_s28] sm:$0xff] %vm261_vm0, %v290_v27 }
  0x4a   : > { %577 = shalt.err (!%p574_p7)
}
  0x4b   : > { %s578_s27 = scalar_lea.hbm %s305_s8, 128  ;;  %s582_s6 = scalar_lea.hbm %s855_s2, 256 }
  0x4c   : > { %p579_p10 = scmp.ne.s32.totalorder %s305_s8, %s578_s27  ;;  %p583_p3 = scmp.lt.s32.totalorder %s305_s8, %s855_s2 }
  0x4d   : > { %p584_p8 = scmp.lt.s32.totalorder %s582_s6, %s578_s27 }
  0x4e   : > { %p580_p1 = pnand %p579_p10, %p722_p9 }
  0x4f   : > { %p585_p0 = por %p584_p8, %p583_p3 }
  0x50   : > { %p581_p13 = pneg %p580_p1 }
  0x52   : > { %p586_p12 = pnand %p585_p0, %p581_p13 }
  0x54   : > { %589 = shalt.err (!%p586_p12)
}
  0x55   : > { %442 = dma.vmem_to_hbm [thread:$0]  (%p722_p9), %s308_s29, 128, %s305_s8, %s293_s15  }
  0x56 PF: > { %s319_s18 = sand.u32 1, %s628_s9   ;;  %p862_p2 = scmp.ge.s32.totalorder %s648_s14, 2 }
  0x57   : > { %s320_s19 = scalar_lea.sflag [#allocation4], %s319_s18 }
  0x58   : > { %p452_p5 = pnand %p862_p2, %p729_p11 }
  0x5a   : > { %p453_p6 = pneg %p452_p5 }
  0x5c   : > { %623 = dma.done.wait (%p453_p6), %s320_s19, 128  }
  0x5d   : > { %625 = vsyncadd (%p453_p6), %s320_s19, 4294967168  ;;  %s21_s14 = sadd.s32 1, %s648_s14   ;;  %s863_s9 = smov %s632_s10 }
  0x5e   : > { %p18_p4 = scmp.ge.s32.totalorder %s21_s14, 4   ;;  %s864_s10 = smov %s636_s11 }
  0x5f   : > { %s865_s11 = smov %s727_s23  ;;  %s866_s12 = smov %s644_s13 }
  0x60   : > { %s867_s13 = smov %s869_s17  ;;  %20 = sbr.rel (!%p18_p4) target bundleno = 8 (0x8), region = 90 }
  0x65   :  { %325 = vsyncpa [#allocation3], 1 }
  0x66   :  { %327 = vsyncpa [#allocation3 + $0x1], 1 }
  0x67   :  { %328 = vsyncpa [#allocation6], 1 }
  0x68   :  { %330 = vsyncpa [#allocation6 + $0x1], 1 }
  0x69   :  { %331 = vsyncpa [#allocation4], 1 }
  0x6a   :  { %333 = vsyncpa [#allocation4 + $0x1], 1 }

</bundles_post_ra>
